<compile_context>
chip_gen: v6e
topology: v6e:2x2x1
jax: 0.10.0
libtpu: 0.0.40
codegen_flags: <defaults>
</compile_context>

<pallas_src>
import jax
import jax.numpy as jnp
from jax.experimental import pallas as pl
from jax.experimental.pallas import tpu as pltpu


def _se_kernel(x_ref, wd_ref, bd_ref, wu_ref, bu_ref, o_ref):
    # x_ref block: (1, C, HW) -- one image, channels on sublanes, spatial on lanes
    x = x_ref[0]                                              # (C, HW) f32
    hw = x.shape[1]
    # Global average pool over spatial (cross-lane reduce on the XLU).
    pooled = jnp.sum(x, axis=1, keepdims=True) * (1.0 / hw)   # (C, 1)
    # Squeeze: 1x1 conv == (I, C) @ (C, 1) + bias, then ReLU.
    z = jnp.dot(wd_ref[...], pooled,
                preferred_element_type=jnp.float32) + bd_ref[...]
    z = jnp.maximum(z, 0.0)                                   # (I, 1)
    # Excite: (C, I) @ (I, 1) + bias, then sigmoid -> per-channel gate.
    s = jnp.dot(wu_ref[...], z,
                preferred_element_type=jnp.float32) + bu_ref[...]
    gate = jax.nn.sigmoid(s)                                  # (C, 1)
    # Channel-wise gating, broadcast over the (lane) spatial axis.
    o_ref[0] = (x * gate).astype(o_ref.dtype)


def se_block(x_nchw, w_down, b_down, w_up, b_up):
    """SEBlock forward.

    x_nchw : (N, C, H, W) float32 (PyTorch layout)
    w_down : (I, C)  -- down.weight (out,in,1,1) squeezed;  b_down: (I,)
    w_up   : (C, I)  -- up.weight   (out,in,1,1) squeezed;  b_up:   (C,)
    """
    N, C, H, W = x_nchw.shape
    I = w_down.shape[0]
    HW = H * W
    x = x_nchw.reshape(N, C, HW)  # free contiguous reshape; spatial -> lanes
    wd = w_down.astype(jnp.float32)
    wu = w_up.astype(jnp.float32)
    bd = b_down.reshape(I, 1).astype(jnp.float32)
    bu = b_up.reshape(C, 1).astype(jnp.float32)

    out = pl.pallas_call(
        _se_kernel,
        out_shape=jax.ShapeDtypeStruct((N, C, HW), x.dtype),
        grid_spec=pltpu.PrefetchScalarGridSpec(
            num_scalar_prefetch=0,
            grid=(N,),
            in_specs=[
                pl.BlockSpec((1, C, HW), lambda n: (n, 0, 0)),
                pl.BlockSpec((I, C), lambda n: (0, 0)),
                pl.BlockSpec((I, 1), lambda n: (0, 0)),
                pl.BlockSpec((C, I), lambda n: (0, 0)),
                pl.BlockSpec((C, 1), lambda n: (0, 0)),
            ],
            out_specs=pl.BlockSpec((1, C, HW), lambda n: (n, 0, 0)),
        ),
        compiler_params=pltpu.CompilerParams(
            dimension_semantics=("parallel",),
        ),
    )(x, wd, bd, wu, bu)
    return out.reshape(N, C, H, W)


if __name__ == "__main__":
    key = jax.random.PRNGKey(0)
    N, C, H, W = 2, 4, 16, 16     # batch=2, input_channels=4, spatial=16x16
    internal = 2                  # internal_neurons

    kx, kwd, kbd, kwu, kbu = jax.random.split(key, 5)
    x = jax.random.normal(kx, (N, C, H, W), jnp.float32)
    w_down = jax.random.normal(kwd, (internal, C), jnp.float32) * (1.0 / C ** 0.5)
    b_down = 0.1 * jax.random.normal(kbd, (internal,), jnp.float32)
    w_up = jax.random.normal(kwu, (C, internal), jnp.float32) * (1.0 / internal ** 0.5)
    b_up = 0.1 * jax.random.normal(kbu, (C,), jnp.float32)

    out = se_block(x, w_down, b_down, w_up, b_up)
    jax.block_until_ready(out)

    # Pure-JAX reference (matches the PyTorch SEBlock forward).
    pooled = jnp.mean(x, axis=(2, 3))                    # (N, C)
    z = jnp.maximum(pooled @ w_down.T + b_down, 0.0)     # (N, I)
    gate = jax.nn.sigmoid(z @ w_up.T + b_up)             # (N, C)
    ref = x * gate[:, :, None, None]

    assert out.shape == (N, C, H, W) and out.dtype == jnp.float32
    assert float(jnp.max(jnp.abs(out - ref))) < 1e-5
    print("KERNEL_OK")
</pallas_src>

<mosaic_0001>
module attributes {stable_mosaic.version = 11 : i64} {
  func.func @_se_kernel(%arg0: i32, %arg1: memref<1x4x256xf32, #tpu.memory_space<vmem>>, %arg2: memref<2x4xf32, #tpu.memory_space<vmem>>, %arg3: memref<2x1xf32, #tpu.memory_space<vmem>>, %arg4: memref<4x2xf32, #tpu.memory_space<vmem>>, %arg5: memref<4x1xf32, #tpu.memory_space<vmem>>, %arg6: memref<1x4x256xf32, #tpu.memory_space<vmem>>) attributes {dimension_semantics = [#tpu.dimension_semantics<parallel>], iteration_bounds = array<i64: 2>, scalar_prefetch = 0 : i64, scratch_operands = 0 : i64, tpu.core_type = #tpu.core_type<tc>, window_params = [{transform_indices = @transform_0, window_bounds = array<i64: 1, 4, 256>}, {pipeline_mode = #tpu.pipeline_mode<synchronous>, transform_indices = @transform_1, window_bounds = array<i64: 2, 4>}, {pipeline_mode = #tpu.pipeline_mode<synchronous>, transform_indices = @transform_2, window_bounds = array<i64: 2, 1>}, {pipeline_mode = #tpu.pipeline_mode<synchronous>, transform_indices = @transform_3, window_bounds = array<i64: 4, 2>}, {pipeline_mode = #tpu.pipeline_mode<synchronous>, transform_indices = @transform_4, window_bounds = array<i64: 4, 1>}, {transform_indices = @transform_5, window_bounds = array<i64: 1, 4, 256>}]} {
    %c0 = arith.constant 0 : index
    %c0_0 = arith.constant 0 : index
    %c0_1 = arith.constant 0 : index
    %0 = vector.load %arg1[%c0, %c0_0, %c0_1] : memref<1x4x256xf32, #tpu.memory_space<vmem>>, vector<1x4x256xf32>
    %1 = vector.shape_cast %0 : vector<1x4x256xf32> to vector<4x256xf32>
    %cst = arith.constant dense<0.000000e+00> : vector<4xf32>
    %2 = vector.multi_reduction <add>, %1, %cst [1] : vector<4x256xf32> to vector<4xf32>
    %3 = vector.shape_cast %2 : vector<4xf32> to vector<4x1xf32>
    %cst_2 = arith.constant 3.906250e-03 : f32
    %4 = vector.broadcast %cst_2 : f32 to vector<4x1xf32>
    %5 = arith.mulf %3, %4 : vector<4x1xf32>
    %c0_3 = arith.constant 0 : index
    %c0_4 = arith.constant 0 : index
    %6 = vector.load %arg2[%c0_3, %c0_4] : memref<2x4xf32, #tpu.memory_space<vmem>>, vector<2x4xf32>
    %cst_5 = arith.constant dense<0.000000e+00> : vector<2x1xf32>
    %7 = tpu.matmul %6, %5, %cst_5 {dimension_numbers = #tpu.dot_dimension_numbers<[1], [0], [0], [1], [0, 0, 1, 1], [], []>} : vector<2x4xf32>, vector<4x1xf32>, vector<2x1xf32> -> vector<2x1xf32>
    %c0_6 = arith.constant 0 : index
    %c0_7 = arith.constant 0 : index
    %8 = vector.load %arg3[%c0_6, %c0_7] : memref<2x1xf32, #tpu.memory_space<vmem>>, vector<2x1xf32>
    %9 = arith.addf %7, %8 : vector<2x1xf32>
    %cst_8 = arith.constant 0.000000e+00 : f32
    %10 = vector.broadcast %cst_8 : f32 to vector<2x1xf32>
    %11 = arith.maximumf %9, %10 : vector<2x1xf32>
    %c0_9 = arith.constant 0 : index
    %c0_10 = arith.constant 0 : index
    %12 = vector.load %arg4[%c0_9, %c0_10] : memref<4x2xf32, #tpu.memory_space<vmem>>, vector<4x2xf32>
    %cst_11 = arith.constant dense<0.000000e+00> : vector<4x1xf32>
    %13 = tpu.matmul %12, %11, %cst_11 {dimension_numbers = #tpu.dot_dimension_numbers<[1], [0], [0], [1], [0, 0, 1, 1], [], []>} : vector<4x2xf32>, vector<2x1xf32>, vector<4x1xf32> -> vector<4x1xf32>
    %c0_12 = arith.constant 0 : index
    %c0_13 = arith.constant 0 : index
    %14 = vector.load %arg5[%c0_12, %c0_13] : memref<4x1xf32, #tpu.memory_space<vmem>>, vector<4x1xf32>
    %15 = arith.addf %13, %14 : vector<4x1xf32>
    %16 = arith.negf %15 : vector<4x1xf32>
    %17 = math.exp %16 : vector<4x1xf32>
    %cst_14 = arith.constant 1.000000e+00 : f32
    %18 = vector.broadcast %cst_14 : f32 to vector<4x1xf32>
    %19 = arith.addf %18, %17 : vector<4x1xf32>
    %20 = arith.divf %18, %19 : vector<4x1xf32>
    %21 = vector.broadcast %20 : vector<4x1xf32> to vector<4x256xf32>
    %22 = arith.mulf %1, %21 : vector<4x256xf32>
    %c0_15 = arith.constant 0 : index
    %c0_16 = arith.constant 0 : index
    %c0_17 = arith.constant 0 : index
    %23 = vector.load %arg6[%c0_15, %c0_16, %c0_17] : memref<1x4x256xf32, #tpu.memory_space<vmem>>, vector<1x4x256xf32>
    %24 = vector.shape_cast %23 : vector<1x4x256xf32> to vector<4x256xf32>
    %25 = vector.shape_cast %22 : vector<4x256xf32> to vector<1x4x256xf32>
    tpu.vector_store %arg6[%c0_15, %c0_16, %c0_17], %25 {strides = array<i32>} : memref<1x4x256xf32, #tpu.memory_space<vmem>>, vector<1x4x256xf32>,
    return
  }
  func.func @transform_0(%arg0: i32) -> (i32, i32, i32) {
    %c0_i32 = arith.constant 0 : i32
    %c0_i32_0 = arith.constant 0 : i32
    %c0_i32_1 = arith.constant 0 : i32
    return %arg0, %c0_i32, %c0_i32_0 : i32, i32, i32
  }
  func.func @transform_1(%arg0: i32) -> (i32, i32) {
    %c0_i32 = arith.constant 0 : i32
    %c0_i32_0 = arith.constant 0 : i32
    %c0_i32_1 = arith.constant 0 : i32
    return %c0_i32, %c0_i32_0 : i32, i32
  }
  func.func @transform_2(%arg0: i32) -> (i32, i32) {
    %c0_i32 = arith.constant 0 : i32
    %c0_i32_0 = arith.constant 0 : i32
    %c0_i32_1 = arith.constant 0 : i32
    return %c0_i32, %c0_i32_0 : i32, i32
  }
  func.func @transform_3(%arg0: i32) -> (i32, i32) {
    %c0_i32 = arith.constant 0 : i32
    %c0_i32_0 = arith.constant 0 : i32
    %c0_i32_1 = arith.constant 0 : i32
    return %c0_i32, %c0_i32_0 : i32, i32
  }
  func.func @transform_4(%arg0: i32) -> (i32, i32) {
    %c0_i32 = arith.constant 0 : i32
    %c0_i32_0 = arith.constant 0 : i32
    %c0_i32_1 = arith.constant 0 : i32
    return %c0_i32, %c0_i32_0 : i32, i32
  }
  func.func @transform_5(%arg0: i32) -> (i32, i32, i32) {
    %c0_i32 = arith.constant 0 : i32
    %c0_i32_0 = arith.constant 0 : i32
    %c0_i32_1 = arith.constant 0 : i32
    return %arg0, %c0_i32, %c0_i32_0 : i32, i32, i32
  }
}

</mosaic_0001>

<bundles_post_ra>
// kernel: tpu_custom_call.1
= control target key start
LH: loop header
LB: loop body
LE: loop exit
PB: predicated region body
PF: predicated region fallthrough
CT: control target
= control target key end

     0   :  { %10 = vsyncpa [#allocation3], 0  ;;  %s898_s0 = inlined_call_operand.hbm [shape: f32[2,4,256], index: 0, kind: input, shape index: {}]   ;;  %s899_s1 = inlined_call_operand.vmem [shape: f32[2,4], index: 1, kind: input, shape index: {}]   ;;  %s900_s2 = inlined_call_operand.vmem [shape: f32[2,1], index: 2, kind: input, shape index: {}]   ;;  %s901_s3 = inlined_call_operand.vmem [shape: f32[4,2], index: 3, kind: input, shape index: {}]   ;;  %s902_s4 = inlined_call_operand.vmem [shape: f32[4,1], index: 4, kind: input, shape index: {}]   ;;  %s903_s5 = inlined_call_operand.hbm [shape: f32[2,4,256], index: 5, kind: output, shape index: {}]  }
   0x1   :  { %12 = vsyncpa [#allocation3 + $0x1], 0 }
   0x2   :  { %13 = vsyncpa [#allocation4], 0 }
   0x3   :  { %15 = vsyncpa [#allocation4 + $0x1], 0  ;;  %s738_s18 = smov 0   ;;  %s740_s19 = smov 0  }
   0x4   :  { %s742_s20 = smov 0   ;;  %s744_s21 = smov 0  }
   0x5 LB: > { %s759_s22 = sadd.s32 4294967295, %s700_s21   ;;  %s517_s23 = sadd.s32 4294967294, %s700_s21   ;;  %s700_s21 = sphi %s744_s21, %s920_s21   ;;  %s696_s20 = sphi %s742_s20, %s919_s20   ;;  %s692_s19 = sphi %s740_s19, %s918_s19   ;;  %s688_s18 = sphi %s738_s18, %s917_s18  }
   0x6   : > { %s763_s24 = sadd.s32 1, %s700_s21   ;;  %s28_s25 = sadd.s32 1, %s696_s20 }
   0x7   : > { %s25_s26 = ssub.s32 %s700_s21, %s763_s24  ;;  %p35_p0 = scmp.ne.s32.totalorder %s696_s20, %s692_s19 }
   0x8   : > { %p26_p1 = scmp.eq.s32.totalorder %s25_s26, 0  ;;  %p36_p2 = scmp.eq.s32.totalorder %s700_s21, 0 }
   0x9   : > { %p41_p3 = scmp.ne.s32.totalorder %s692_s19, %s688_s18  ;;  %p42_p4 = scmp.eq.s32.totalorder %s759_s22, 0 }
   0xa   : > { %s775_s27 = scalar_select %p26_p1, %s696_s20, %s28_s25  }
   0xb   : > { %p777_p5 = por %p36_p2, %p35_p0  ;;  %p781_p6 = por %p42_p4, %p41_p3 }
   0xc   : > { %p149_p7 = scmp.eq.s32.totalorder %s759_s22, 1  ;;  %p155_p8 = scmp.eq.s32.totalorder %s517_s23, 1 }
   0xd   : > { %s907_s29 = scalar_select %p781_p6, 1, 0 }
   0xe   : > { %p564_p10 = scmp.lt.s32.totalorder %s700_s21, 2  ;;  %p788_p11 = por %p149_p7, %p35_p0 }
   0xf   : > { %p792_p12 = por %p155_p8, %p41_p3  ;;  %s187_s7 = sand.u32 1, %s696_s20  }
  0x10   : > { %s908_s30 = scalar_select %p788_p11, 1, 0 }
  0x11   : > { %s909_s6 = scalar_select %p792_p12, 1, 0 }
  0x12   : > { %s536_s8 = sshll.u32 %s700_s21, 7  ;;  %s520_s9 = sshll.u32 %s187_s7, 3 }
  0x13   : > { %s801_s12 = scalar_lea.hbm %s898_s0, %s536_s8  ;;  %s191_s13 = scalar_lea.vmem [#allocation2], %s520_s9 }
  0x14   : > { %s199_s14 = sshll.u32 %s191_s13, 4  ;;  %p805_p13 = pnand %p564_p10, %p777_p5  ;;  %s809_s14 = int_to_ptr.vmem [resolvable:$true] %s199_s14 }
  0x15   : > { %s188_s16 = scalar_lea.sflag [#allocation3], %s187_s7  ;;  %s608_s17 = scalar_lea.hbm %s801_s12, 128 }
  0x16   : > { %p609_p2 = scmp.ne.s32.totalorder %s801_s12, %s608_s17  ;;  %p610_p3 = pneg %p805_p13 }
  0x17   : > { %s613_s26 = scalar_lea.hbm %s898_s0, 256  ;;  %p614_p5 = scmp.lt.s32.totalorder %s801_s12, %s898_s0 }
  0x18   : > { %p611_p4 = pnand %p610_p3, %p609_p2  ;;  %p615_p8 = scmp.lt.s32.totalorder %s613_s26, %s608_s17 }
  0x1a   : > { %p612_p7 = pneg %p611_p4  ;;  %p616_p10 = por %p615_p8, %p614_p5 }
  0x1c   : > { %p617_p9 = pnand %p616_p10, %p612_p7 }
  0x1e   : > { %620 = shalt.err (!%p617_p9)
}
  0x1f   : > { %s621_s7 = scalar_lea.vmem %s809_s14, 128  ;;  %s702_s9 = smov [#allocation2]  }
  0x20   : > { %p622_p0 = scmp.ne.s32.totalorder %s809_s14, %s621_s7  ;;  %s626_s10 = sshll.u32 %s702_s9, 4  ;;  %s627_s10 = int_to_ptr.vmem [resolvable:$false] %s626_s10 }
  0x21   : > { %s628_s11 = scalar_lea.vmem %s627_s10, 256  ;;  %p629_p4 = scmp.lt.s32.totalorder %s809_s14, %s627_s10 }
  0x22   : > { %p624_p1 = pnand %p622_p0, %p610_p3  ;;  %p630_p12 = scmp.lt.s32.totalorder %s628_s11, %s621_s7 }
  0x24   : > { %p625_p2 = pneg %p624_p1  ;;  %p631_p11 = por %p630_p12, %p629_p4 }
  0x26   : > { %p632_p6 = pnand %p631_p11, %p625_p2 }
  0x28   : > { %635 = shalt.err (!%p632_p6)
}
  0x29   : > { %559 = dma.hbm_to_vmem [thread:$0]  (!%p805_p13), %s801_s12, 128, %s809_s14, %s188_s16  }
  0x2a   : > { %p911_p9 = scmp.lt.s32.totalorder %s700_s21, 3  ;;  %p912_p7 = scmp.ge.s32.totalorder %s700_s21, 1 }
  0x2c   : > { %p205_p0 = pnand %p912_p7, %p911_p9 }
  0x2d   : > { %s836_s13 = sand.u32 (!%p205_p0), 1, %s692_s19   ;;  %p913_p6 = scmp.ne.s32.totalorder (!%p205_p0), %s907_s29, 0 }
  0x2e   : > { %208 = sbr.rel (%p205_p0) target bundleno = 765 (0x2fd), region = 40  ;;  %s524_s17 = sshll.u32 (!%p205_p0), %s836_s13, 3 }
  0x2f   : > { %s211_s23 = scalar_lea.sflag (!%p205_p0), [#allocation3], %s836_s13  ;;  %s214_s15 = scalar_lea.vmem (!%p205_p0), [#allocation2], %s524_s17 }
  0x33   : > { %679 = dma.done.wait (%p913_p6), %s211_s23, 128  }
  0x34   : > { %681 = vsyncadd (%p913_p6), %s211_s23, 4294967168  ;;  %vm245_vm0 = vcmask 1043456   ;;  %v241_v0 = vld [vmem:[%s214_s15] sm:$0xff]  ;;  %v703_v5 = vmov 0.0   ;;  %vm704_vm1 = vmmov 0   ;;  %vm254_vm2 = vcmask 31744  }
  0x35   : > { %v243_v1 = vcombine.high %v241_v0, %v241_v0  ;;  %v246_v2 = vsel %vm245_vm0, %v241_v0, 0.0  ;;  %542 = vmatprep.subr.mxu0 %v703_v5  ;;  %547 = vmatprep.subr.mxu1 %v703_v5  ;;  %v252_v8 = vld [vmem:[%s899_s1] sm:$0x3]  ;;  %vm338_vm3 = vcmask 1041408   ;;  %vm334_vm4 = vcmask 15360   ;;  %s537_s7 = sshll.u32 %s759_s22, 7 }
  0x36   : > { %544 = vmatprep.mubr.msk.f32.mxu0 %vm704_vm1, %v703_v5  ;;  %549 = vmatprep.mubr.msk.f32.mxu1 %vm704_vm1, %v703_v5  ;;  %v253_v9 = vld [vmem:[%s900_s2] sm:$0x3]  ;;  %v705_v15 = vmov 0   ;;  %v706_v24 = vmov 839922192   ;;  %v425_v26 = vlaneseq  ;;  %s240_s9 = scalar_lea.vmem [#allocation5], %s524_s17  ;;  %s445_s15 = scalar_lea.hbm %s903_s5, %s537_s7 }
  0x37   : > { %v247_v3 = vsel %vm245_vm0, %v243_v1, 0.0  ;;  %v332_v14 = vld [vmem:[%s901_s3] sm:$0xf]  ;;  %602 = vset.pattern.permute.xlu0 %v705_v15  ;;  %v423_v25 = vunpack.c.l.s4 %v706_v24  ;;  %s447_s10 = sshll.u32 %s240_s9, 4  ;;  %s433_s12 = scalar_lea.sflag [#allocation4], %s836_s13  ;;  %s448_s10 = int_to_ptr.vmem [resolvable:$true] %s447_s10 }
  0x38   : > { %v248_v4 = vadd.f32 %v247_v3, %v246_v2  ;;  %v333_v16 = vld [vmem:[%s902_s4] sm:$0xf]  ;;  %v426_v28 = vshrl.u32 %v425_v26, 7  ;;  %s636_s29 = scalar_lea.vmem %s448_s10, 128  ;;  %p914_p12 = scmp.ne.s32.totalorder %s908_s30, 0 }
  0x39   : > { %v424_v27 = vunpack.c.0.s8 %v423_v25  ;;  %p637_p11 = scmp.ne.s32.totalorder %s448_s10, %s636_s29  ;;  %s707_s14 = smov [#allocation5]  }
  0x3a   : > { %249 = vadd.xlane.f32.xlu0 %v248_v4  ;;  %s640_s16 = sshll.u32 %s707_s14, 4  ;;  %s641_s16 = int_to_ptr.vmem [resolvable:$false] %s640_s16 }
  0x3b   : > { %v427_v29 = vsub.s32 %v424_v27, %v426_v28  ;;  %p638_p13 = pnand %p637_p11, %p914_p12  ;;  %s642_s22 = scalar_lea.vmem %s641_s16, 256 }
  0x3c   : > { %p643_p3 = scmp.lt.s32.totalorder %s448_s10, %s641_s16  ;;  %p644_p5 = scmp.lt.s32.totalorder %s642_s22, %s636_s29 }
  0x3d   : > { %p639_p1 = pneg %p638_p13 }
  0x3e   : > { %p645_p8 = por %p644_p5, %p643_p3 }
  0x40   : > { %p646_p10 = pnand %p645_p8, %p639_p1 }
  0xc3   : > { %v250_v6 = vpop.xlane.xlu0 %249 }
  0xc4   : > { %v251_v7 = vmul.f32 0.00390625, %v250_v6 }
  0xc6   : > { %543 = vmatpush3.msk.msra.mxu0 %vm245_vm0, %v251_v7 }
  0xc7   : > { %545 = vmatmul.mubr.msk.f32.vlgmr.msra.gmra.mxu0 %vm254_vm2, %v252_v8 }
 0x187   : > { %v327_v10 = vpop.f32.mrf.mxu0 }
 0x188   : > { %v328_v11 = vadd.f32 %v327_v10, %v253_v9 }
 0x189   : > { %v546_v12 = vpop.f32.mrf.mxu0 }
 0x18a   : > { %v331_v13 = vmax.f32 %v328_v11, 0.0 }
 0x18c   : > { %548 = vmatpush3.msk.msra.mxu1 %vm338_vm3, %v331_v13 }
 0x18d   : > { %550 = vmatmul.mubr.msk.f32.vlgmr.msra.gmra.mxu1 %vm334_vm4, %v332_v14 }
 0x24d   : > { %v408_v17 = vpop.f32.mrf.mxu1 }
 0x24e   : > { %v409_v18 = vadd.f32 %v408_v17, %v333_v16 }
 0x24f   : > { %v551_v19 = vpop.f32.mrf.mxu1 }
 0x250   : > { %v530_v20 = vmul.f32 -1.442695, %v409_v18 }
 0x252   : > { %604 = vpow2.f32 %v530_v20 }
 0x25f   : > { %v605_v21 = vpop.eup %604 }
 0x260   : > { %v415_v22 = vadd.f32 1.0, %v605_v21 }
 0x262   : > { %606 = vrcp.f32 %v415_v22 }
 0x26f   : > { %v607_v23 = vpop.eup %606 }
 0x270   : > { %420 = vperm.xlu0 %602, %v607_v23  }
 0x2eb   : > { %v421_v30 = vpop.permute.xlu0 %420 }
 0x2ec   : > { %v428_v31 = vrot.slane %v421_v30, %v427_v29 }
 0x2ee   : > { %v430_v32 = vmul.f32 %v428_v31, %v241_v0 }
 0x2f0   : > { %431 = vst [vmem:[%s240_s9] sm:$0xff] %v430_v32 }
 0x2f1   : > { %649 = shalt.err (!%p646_p10)
}
 0x2f2   : > { %s650_s17 = scalar_lea.hbm %s445_s15, 128  ;;  %s654_s26 = scalar_lea.hbm %s903_s5, 256 }
 0x2f3   : > { %p651_p2 = scmp.ne.s32.totalorder %s445_s15, %s650_s17  ;;  %p655_p7 = scmp.lt.s32.totalorder %s445_s15, %s903_s5 }
 0x2f4   : > { %p656_p0 = scmp.lt.s32.totalorder %s654_s26, %s650_s17 }
 0x2f5   : > { %p652_p4 = pnand %p651_p2, %p914_p12 }
 0x2f6   : > { %p657_p6 = por %p656_p0, %p655_p7 }
 0x2f7   : > { %p653_p9 = pneg %p652_p4 }
 0x2f9   : > { %p658_p11 = pnand %p657_p6, %p653_p9 }
 0x2fb   : > { %661 = shalt.err (!%p658_p11)
}
 0x2fc   : > { %554 = dma.vmem_to_hbm [thread:$0]  (%p914_p12), %s448_s10, 128, %s445_s15, %s433_s12  }
 0x2fd PF: > { %s459_s7 = sand.u32 1, %s688_s18   ;;  %p915_p13 = scmp.ne.s32.totalorder %s909_s6, 0 }
 0x2fe   : > { %p916_p1 = scmp.ge.s32.totalorder %s700_s21, 2  ;;  %s460_s9 = scalar_lea.sflag [#allocation4], %s459_s7 }
 0x300   : > { %p561_p3 = pnand %p916_p1, %p915_p13 }
 0x302   : > { %p562_p5 = pneg %p561_p3 }
 0x304   : > { %683 = dma.done.wait (%p562_p5), %s460_s9, 128  }
 0x305   : > { %685 = vsyncadd (%p562_p5), %s460_s9, 4294967168  ;;  %p18_p8 = scmp.ge.s32.totalorder %s763_s24, 4   ;;  %s917_s18 = smov %s692_s19 }
 0x306   : > { %s918_s19 = smov %s696_s20  ;;  %s919_s20 = smov %s775_s27 }
 0x307   : > { %s920_s21 = smov %s763_s24  ;;  %20 = sbr.rel (!%p18_p8) target bundleno = 5 (0x5), region = 85 }
 0x30c   :  { %465 = vsyncpa [#allocation3], 1 }
 0x30d   :  { %467 = vsyncpa [#allocation3 + $0x1], 1 }
 0x30e   :  { %468 = vsyncpa [#allocation4], 1 }
 0x30f   :  { %470 = vsyncpa [#allocation4 + $0x1], 1 }

</bundles_post_ra>
